<compile_context>
chip_gen: v7x
topology: tpu7x:2x2x1
jax: 0.10.0
libtpu: 0.0.40
codegen_flags: <defaults>
</compile_context>

<pallas_src>
import functools

import jax
import jax.numpy as jnp
from jax.experimental import pallas as pl
from jax.experimental.pallas import tpu as pltpu

IN_DIM, H1, H2, OUT_DIM = 11, 12, 9, 1
_LANE = 128


def _round_up(n, m):
    return ((n + m - 1) // m) * m


def _cdiv(a, b):
    return (a + b - 1) // b


def _tpu_generation():
    try:
        kind = jax.devices()[0].device_kind.lower()
    except Exception:  # pragma: no cover - defensive; assume TPU backend.
        return "unknown"
    if ("v5e" in kind) or ("v5 lite" in kind) or ("v5lite" in kind):
        return "v5e"
    if "v6" in kind:
        return "v6e"
    if ("7x" in kind) or ("v7" in kind):
        return "v7x"
    if ("v5" in kind) or ("v4" in kind):  # v5p / v4: 128 MiB VMEM per core
        return "big_vmem"
    return "unknown"


# generation -> (batch tile, vmem_limit_bytes (None = default scoped), num TCs)
_GEN_CONFIG = {
    "v5e":      (32 * 1024, 64 << 20, 1),
    "v6e":      (64 * 1024, 96 << 20, 1),
    "big_vmem": (64 * 1024, 96 << 20, 1),
    "v7x":      (64 * 1024, 48 << 20, 2),   # do not exceed ~48-56 MiB on v7x
    "unknown":  (16 * 1024, None,     1),
}


def _mlp_kernel(x_ref, w1_ref, b1_ref, w2_ref, b2_ref, w3_ref, b3_ref, o_ref):
    """Fused fc1 -> ReLU -> fc2 -> ReLU -> fc3 -> Sigmoid on one batch tile.

    Layout: x tile is (11, tb) with batch on the lane axis; weights are in
    PyTorch (out, in) layout; biases are (out, 1) columns broadcasting over
    lanes.  Output tile is (1, tb), i.e. lane-dense.
    """
    hi = jax.lax.Precision.HIGHEST
    x = x_ref[...].astype(jnp.float32)  # upcast is a no-op on the f32 path

    # fc1 + ReLU : (12, 11) @ (11, tb) -> (12, tb)
    h1 = jnp.dot(w1_ref[...], x, preferred_element_type=jnp.float32,
                 precision=hi) + b1_ref[...]
    h1 = jnp.maximum(h1, 0.0)

    # fc2 + ReLU : (9, 12) @ (12, tb) -> (9, tb)
    h2 = jnp.dot(w2_ref[...], h1, preferred_element_type=jnp.float32,
                 precision=hi) + b2_ref[...]
    h2 = jnp.maximum(h2, 0.0)

    # fc3 + Sigmoid : (1, 9) @ (9, tb) -> (1, tb)
    z = jnp.dot(w3_ref[...], h2, preferred_element_type=jnp.float32,
                precision=hi) + b3_ref[...]
    o_ref[...] = pl.reciprocal(1.0 + jnp.exp(-z), approx=False).astype(o_ref.dtype)


@functools.partial(jax.jit,
                   static_argnames=("tb", "vmem_limit_bytes", "fuse_x_input"))
def _wine_forward_padded(xt, w1, b1, w2, b2, w3, b3, *,
                         tb, vmem_limit_bytes, fuse_x_input):
    """xt: (11, B_pad) with B_pad % 128 == 0 and tb % 128 == 0."""
    B_pad = xt.shape[1]
    grid = (_cdiv(B_pad, tb),)  # ragged last block handled by Pallas
    full = lambda i: (0, 0)     # weights/biases: same full block every step

    allow_fusion = ([True] + [False] * 6) if fuse_x_input else None

    return pl.pallas_call(
        _mlp_kernel,
        out_shape=jax.ShapeDtypeStruct((OUT_DIM, B_pad), jnp.float32),
        grid_spec=pltpu.PrefetchScalarGridSpec(
            num_scalar_prefetch=0,
            grid=grid,
            in_specs=[
                pl.BlockSpec((IN_DIM, tb), lambda i: (0, i)),   # x tile (11, tb)
                pl.BlockSpec((H1, IN_DIM), full),               # w1 (12, 11)
                pl.BlockSpec((H1, 1), full),                    # b1 (12, 1)
                pl.BlockSpec((H2, H1), full),                   # w2 (9, 12)
                pl.BlockSpec((H2, 1), full),                    # b2 (9, 1)
                pl.BlockSpec((OUT_DIM, H2), full),              # w3 (1, 9)
                pl.BlockSpec((OUT_DIM, 1), full),               # b3 (1, 1)
            ],
            out_specs=pl.BlockSpec((OUT_DIM, tb), lambda i: (0, i)),
        ),
        compiler_params=pltpu.CompilerParams(
            dimension_semantics=("parallel",),
            vmem_limit_bytes=vmem_limit_bytes,
            allow_input_fusion=allow_fusion,
        ),
    )(xt, w1, b1, w2, b2, w3, b3)


def _choose_tile(B_pad, gen_tb, num_tc):
    """128-aligned batch tile <= B_pad; even step count when >1 TC."""
    tb = min(gen_tb, B_pad)
    steps = _cdiv(B_pad, tb)
    if num_tc > 1 and steps > 1 and steps % 2 == 1:
        steps += 1
        tb = max(_LANE, _round_up(_cdiv(B_pad, steps), _LANE))
    return tb


def wine_model_forward_feature_major(xt, params, *, tb=None,
                                     input_dtype=jnp.float32,
                                     fuse_x_input=False):
    """Fast path: xt is (11, B) feature-major (batch on lanes). Returns (1, B)."""
    gen = _tpu_generation()
    gen_tb, vmem_limit, num_tc = _GEN_CONFIG[gen]

    B = xt.shape[1]
    B_pad = _round_up(max(B, 1), _LANE)
    if tb is None:
        tb = _choose_tile(B_pad, gen_tb, num_tc)
    else:
        tb = max(_LANE, _round_up(int(tb), _LANE))

    xt = xt.astype(input_dtype)
    if B_pad != B:
        xt = jnp.pad(xt, ((0, 0), (0, B_pad - B)))

    w1 = params["w1"]                       # (12, 11)
    w2 = params["w2"]                       # (9, 12)
    w3 = params["w3"]                       # (1, 9)
    b1 = params["b1"].reshape(H1, 1)        # (12, 1)
    b2 = params["b2"].reshape(H2, 1)        # (9, 1)
    b3 = params["b3"].reshape(OUT_DIM, 1)   # (1, 1)

    out_t = _wine_forward_padded(xt, w1, b1, w2, b2, w3, b3, tb=tb,
                                 vmem_limit_bytes=vmem_limit,
                                 fuse_x_input=fuse_x_input)  # (1, B_pad)
    return out_t[:, :B]


def wine_model_forward(x, params, *, tb=None, input_dtype=jnp.float32,
                       fuse_x_input=False):
    """Module-facing wrapper: x is (B, 11) f32, returns (B, 1) f32.

    The transpose to the feature-major kernel layout happens here; for peak
    bandwidth produce x as (11, B) upstream and call
    wine_model_forward_feature_major directly, or pass fuse_x_input=True to
    let XLA pull the transpose into the pallas_call input.
    """
    out_t = wine_model_forward_feature_major(
        x.T, params, tb=tb, input_dtype=input_dtype, fuse_x_input=fuse_x_input)
    return out_t.T  # (B, 1)


def init_params(key):
    """Deterministic synthetic init matching nn.Linear shapes (out, in)/(out,)."""
    ks = jax.random.split(key, 6)

    def unif(k, shape, fan_in):
        bound = 1.0 / jnp.sqrt(fan_in)
        return jax.random.uniform(k, shape, jnp.float32, -bound, bound)

    return {
        "w1": unif(ks[0], (H1, IN_DIM), IN_DIM),
        "b1": unif(ks[1], (H1,), IN_DIM),
        "w2": unif(ks[2], (H2, H1), H1),
        "b2": unif(ks[3], (H2,), H1),
        "w3": unif(ks[4], (OUT_DIM, H2), H2),
        "b3": unif(ks[5], (OUT_DIM,), H2),
    }


def _reference(x, params):
    hi = jax.lax.Precision.HIGHEST
    h1 = jnp.maximum(jnp.dot(x, params["w1"].T, precision=hi) + params["b1"], 0.0)
    h2 = jnp.maximum(jnp.dot(h1, params["w2"].T, precision=hi) + params["b2"], 0.0)
    z = jnp.dot(h2, params["w3"].T, precision=hi) + params["b3"]
    return jax.nn.sigmoid(z)


if __name__ == "__main__":
    key = jax.random.PRNGKey(0)
    pkey, xkey1, xkey2, xkey3 = jax.random.split(key, 4)

    params = init_params(pkey)

    # 1) Small batch: pads 8 -> 128, single grid step.
    x_small = jax.random.normal(xkey1, (8, IN_DIM), dtype=jnp.float32)
    out_small = jax.block_until_ready(wine_model_forward(x_small, params))
    ref_small = _reference(x_small, params)
    assert out_small.shape == (8, OUT_DIM)
    assert jnp.allclose(out_small, ref_small, atol=1e-5, rtol=1e-5), \
        "small-batch mismatch vs JAX reference"

    # 2) Ragged batch: pads 300 -> 384 (lane multiple only), single grid step.
    x_mid = jax.random.normal(xkey2, (300, IN_DIM), dtype=jnp.float32)
    out_mid = jax.block_until_ready(wine_model_forward(x_mid, params))
    ref_mid = _reference(x_mid, params)
    assert out_mid.shape == (300, OUT_DIM)
    assert jnp.allclose(out_mid, ref_mid, atol=1e-5, rtol=1e-5), \
        "ragged-batch mismatch vs JAX reference"

    # 3) Multi-step grid with a ragged LAST block: B=600 -> B_pad=640, tb=256
    #    -> grid of 3 where the final block is partial (exercises the new
    #    cdiv-grid path that replaced pad-to-tile).
    x_big = jax.random.normal(xkey3, (600, IN_DIM), dtype=jnp.float32)
    out_big = jax.block_until_ready(wine_model_forward(x_big, params, tb=256))
    ref_big = _reference(x_big, params)
    assert out_big.shape == (600, OUT_DIM)
    assert jnp.allclose(out_big, ref_big, atol=1e-5, rtol=1e-5), \
        "multi-step ragged-last-block mismatch vs JAX reference"

    # 4) Optional bf16-input path (halves x HBM traffic); looser tolerance.
    out_bf16 = jax.block_until_ready(
        wine_model_forward(x_mid, params, input_dtype=jnp.bfloat16))
    assert out_bf16.shape == (300, OUT_DIM)
    assert jnp.allclose(out_bf16, ref_mid, atol=5e-2, rtol=5e-2), \
        "bf16-input path mismatch vs JAX reference"

    print("KERNEL_OK")
</pallas_src>

<mosaic_0001>
module attributes {stable_mosaic.version = 11 : i64} {
  func.func @_mlp_kernel(%arg0: i32, %arg1: memref<11x128xf32, #tpu.memory_space<vmem>>, %arg2: memref<12x11xf32, #tpu.memory_space<vmem>>, %arg3: memref<12x1xf32, #tpu.memory_space<vmem>>, %arg4: memref<9x12xf32, #tpu.memory_space<vmem>>, %arg5: memref<9x1xf32, #tpu.memory_space<vmem>>, %arg6: memref<1x9xf32, #tpu.memory_space<vmem>>, %arg7: memref<1x1xf32, #tpu.memory_space<vmem>>, %arg8: memref<1x128xf32, #tpu.memory_space<vmem>>) attributes {dimension_semantics = [#tpu.dimension_semantics<parallel>], iteration_bounds = array<i64: 1>, scalar_prefetch = 0 : i64, scratch_operands = 0 : i64, tpu.core_type = #tpu.core_type<tc>, window_params = [{transform_indices = @transform_0, window_bounds = array<i64: 11, 128>}, {pipeline_mode = #tpu.pipeline_mode<synchronous>, transform_indices = @transform_1, window_bounds = array<i64: 12, 11>}, {pipeline_mode = #tpu.pipeline_mode<synchronous>, transform_indices = @transform_2, window_bounds = array<i64: 12, 1>}, {pipeline_mode = #tpu.pipeline_mode<synchronous>, transform_indices = @transform_3, window_bounds = array<i64: 9, 12>}, {pipeline_mode = #tpu.pipeline_mode<synchronous>, transform_indices = @transform_4, window_bounds = array<i64: 9, 1>}, {pipeline_mode = #tpu.pipeline_mode<synchronous>, transform_indices = @transform_5, window_bounds = array<i64: 1, 9>}, {pipeline_mode = #tpu.pipeline_mode<synchronous>, transform_indices = @transform_6, window_bounds = array<i64: 1, 1>}, {transform_indices = @transform_7, window_bounds = array<i64: 1, 128>}]} {
    %c0 = arith.constant 0 : index
    %c0_0 = arith.constant 0 : index
    %0 = vector.load %arg1[%c0, %c0_0] : memref<11x128xf32, #tpu.memory_space<vmem>>, vector<11x128xf32>
    %c0_1 = arith.constant 0 : index
    %c0_2 = arith.constant 0 : index
    %1 = vector.load %arg2[%c0_1, %c0_2] : memref<12x11xf32, #tpu.memory_space<vmem>>, vector<12x11xf32>
    %cst = arith.constant dense<0.000000e+00> : vector<12x128xf32>
    %2 = tpu.matmul %1, %0, %cst {dimension_numbers = #tpu.dot_dimension_numbers<[1], [0], [0], [1], [0, 0, 1, 1], [], []>, precision = #tpu.contract_precision<fp32>} : vector<12x11xf32>, vector<11x128xf32>, vector<12x128xf32> -> vector<12x128xf32>
    %c0_3 = arith.constant 0 : index
    %c0_4 = arith.constant 0 : index
    %3 = vector.load %arg3[%c0_3, %c0_4] : memref<12x1xf32, #tpu.memory_space<vmem>>, vector<12x1xf32>
    %4 = vector.broadcast %3 : vector<12x1xf32> to vector<12x128xf32>
    %5 = arith.addf %2, %4 : vector<12x128xf32>
    %cst_5 = arith.constant 0.000000e+00 : f32
    %6 = vector.broadcast %cst_5 : f32 to vector<12x128xf32>
    %7 = arith.maximumf %5, %6 : vector<12x128xf32>
    %c0_6 = arith.constant 0 : index
    %c0_7 = arith.constant 0 : index
    %8 = vector.load %arg4[%c0_6, %c0_7] : memref<9x12xf32, #tpu.memory_space<vmem>>, vector<9x12xf32>
    %cst_8 = arith.constant dense<0.000000e+00> : vector<9x128xf32>
    %9 = tpu.matmul %8, %7, %cst_8 {dimension_numbers = #tpu.dot_dimension_numbers<[1], [0], [0], [1], [0, 0, 1, 1], [], []>, precision = #tpu.contract_precision<fp32>} : vector<9x12xf32>, vector<12x128xf32>, vector<9x128xf32> -> vector<9x128xf32>
    %c0_9 = arith.constant 0 : index
    %c0_10 = arith.constant 0 : index
    %10 = vector.load %arg5[%c0_9, %c0_10] : memref<9x1xf32, #tpu.memory_space<vmem>>, vector<9x1xf32>
    %11 = vector.broadcast %10 : vector<9x1xf32> to vector<9x128xf32>
    %12 = arith.addf %9, %11 : vector<9x128xf32>
    %cst_11 = arith.constant 0.000000e+00 : f32
    %13 = vector.broadcast %cst_11 : f32 to vector<9x128xf32>
    %14 = arith.maximumf %12, %13 : vector<9x128xf32>
    %c0_12 = arith.constant 0 : index
    %c0_13 = arith.constant 0 : index
    %15 = vector.load %arg6[%c0_12, %c0_13] : memref<1x9xf32, #tpu.memory_space<vmem>>, vector<1x9xf32>
    %cst_14 = arith.constant dense<0.000000e+00> : vector<1x128xf32>
    %16 = tpu.matmul %15, %14, %cst_14 {dimension_numbers = #tpu.dot_dimension_numbers<[1], [0], [0], [1], [0, 0, 1, 1], [], []>, precision = #tpu.contract_precision<fp32>} : vector<1x9xf32>, vector<9x128xf32>, vector<1x128xf32> -> vector<1x128xf32>
    %c0_15 = arith.constant 0 : index
    %c0_16 = arith.constant 0 : index
    %17 = vector.load %arg7[%c0_15, %c0_16] : memref<1x1xf32, #tpu.memory_space<vmem>>, vector<1x1xf32>
    %18 = vector.broadcast %17 : vector<1x1xf32> to vector<1x128xf32>
    %19 = arith.addf %16, %18 : vector<1x128xf32>
    %cst_17 = arith.constant 0.000000e+00 : f32
    %20 = vector.broadcast %cst_17 : f32 to vector<1x128xf32>
    %21 = arith.subf %20, %19 : vector<1x128xf32>
    %22 = math.exp %21 : vector<1x128xf32>
    %cst_18 = arith.constant 1.000000e+00 : f32
    %23 = vector.broadcast %cst_18 : f32 to vector<1x128xf32>
    %24 = arith.addf %23, %22 : vector<1x128xf32>
    %25 = tpu.reciprocal %24 : vector<1x128xf32> -> vector<1x128xf32>
    %c0_19 = arith.constant 0 : index
    %c0_20 = arith.constant 0 : index
    %26 = vector.load %arg8[%c0_19, %c0_20] : memref<1x128xf32, #tpu.memory_space<vmem>>, vector<1x128xf32>
    tpu.vector_store %arg8[%c0_19, %c0_20], %25 {strides = array<i32>} : memref<1x128xf32, #tpu.memory_space<vmem>>, vector<1x128xf32>,
    return
  }
  func.func @transform_0(%arg0: i32) -> (i32, i32) {
    %c0_i32 = arith.constant 0 : i32
    %c0_i32_0 = arith.constant 0 : i32
    return %c0_i32, %arg0 : i32, i32
  }
  func.func @transform_1(%arg0: i32) -> (i32, i32) {
    %c0_i32 = arith.constant 0 : i32
    %c0_i32_0 = arith.constant 0 : i32
    %c0_i32_1 = arith.constant 0 : i32
    return %c0_i32, %c0_i32_0 : i32, i32
  }
  func.func @transform_2(%arg0: i32) -> (i32, i32) {
    %c0_i32 = arith.constant 0 : i32
    %c0_i32_0 = arith.constant 0 : i32
    %c0_i32_1 = arith.constant 0 : i32
    return %c0_i32, %c0_i32_0 : i32, i32
  }
  func.func @transform_3(%arg0: i32) -> (i32, i32) {
    %c0_i32 = arith.constant 0 : i32
    %c0_i32_0 = arith.constant 0 : i32
    %c0_i32_1 = arith.constant 0 : i32
    return %c0_i32, %c0_i32_0 : i32, i32
  }
  func.func @transform_4(%arg0: i32) -> (i32, i32) {
    %c0_i32 = arith.constant 0 : i32
    %c0_i32_0 = arith.constant 0 : i32
    %c0_i32_1 = arith.constant 0 : i32
    return %c0_i32, %c0_i32_0 : i32, i32
  }
  func.func @transform_5(%arg0: i32) -> (i32, i32) {
    %c0_i32 = arith.constant 0 : i32
    %c0_i32_0 = arith.constant 0 : i32
    %c0_i32_1 = arith.constant 0 : i32
    return %c0_i32, %c0_i32_0 : i32, i32
  }
  func.func @transform_6(%arg0: i32) -> (i32, i32) {
    %c0_i32 = arith.constant 0 : i32
    %c0_i32_0 = arith.constant 0 : i32
    %c0_i32_1 = arith.constant 0 : i32
    return %c0_i32, %c0_i32_0 : i32, i32
  }
  func.func @transform_7(%arg0: i32) -> (i32, i32) {
    %c0_i32 = arith.constant 0 : i32
    %c0_i32_0 = arith.constant 0 : i32
    return %c0_i32, %arg0 : i32, i32
  }
}

</mosaic_0001>

<bundles_post_ra>
// kernel: _wine_forward_padded.1
= control target key start
LH: loop header
LB: loop body
LE: loop exit
PB: predicated region body
PF: predicated region fallthrough
CT: control target
= control target key end

     0   :  { %s2020_s0 = inlined_call_operand.vmem [shape: f32[11,128], index: 0, kind: input, shape index: {}]   ;;  %s2021_s1 = inlined_call_operand.vmem [shape: f32[12,11], index: 1, kind: input, shape index: {}]   ;;  %s2022_s2 = inlined_call_operand.vmem [shape: f32[12,1], index: 2, kind: input, shape index: {}]   ;;  %s2023_s3 = inlined_call_operand.vmem [shape: f32[9,12], index: 3, kind: input, shape index: {}]   ;;  %s2024_s4 = inlined_call_operand.vmem [shape: f32[9,1], index: 4, kind: input, shape index: {}]   ;;  %s2025_s5 = inlined_call_operand.vmem [shape: f32[1,9], index: 5, kind: input, shape index: {}]   ;;  %s2026_s6 = inlined_call_operand.<no memory space> [shape: f32[1,1], index: 6, kind: input, shape index: {}]   ;;  %s2027_s7 = inlined_call_operand.hbm [shape: f32[1,128], index: 7, kind: output, shape index: {}]  }
   0x1   :  { %v12_v0 = vstv %s2026_s6 }
   0x2   :  { %13 = vst [vmem:[#allocation2] sm:$0x1] %v12_v0 }
   0x3   :  { %v29_v1 = vld [vmem:[%s2020_s0] sm:$0xff]  ;;  %v30_v2 = vld [vmem:[%s2020_s0 + $0x8] sm:$0x7]  ;;  %vm52_vm0 = vcmask 1042432   ;;  %vm45_vm1 = vcmask 89088   ;;  %v1915_v11 = vmov 0  }
   0x4   :  { %v31_v3 = vld [vmem:[%s2021_s1] sm:$0xff]  ;;  %v54_v4 = vsel %vm52_vm0, %v30_v2, 0  ;;  %v57_v5 = vand.u32 4294901760, %v29_v1  ;;  %v32_v6 = vld [vmem:[%s2021_s1 + $0x8] sm:$0xf]  ;;  %1885 = vset.pattern.permute.xlu0 %v1915_v11  ;;  %1886 = vset.pattern.permute.xlu1 %v1915_v11 }
   0x5   :  { %v47_v7 = vsel %vm45_vm1, %v31_v3, 0  ;;  %v60_v8 = vand.u32 4294901760, %v54_v4  ;;  %v50_v9 = vsel %vm45_vm1, %v32_v6, 0  ;;  %v34_v12 = vld [vmem:[%s2022_s2 + $0x8] sm:$0xf] }
   0x6   :  { %v123_v10 = vand.u32 4294901760, %v47_v7  ;;  %v133_v13 = vand.u32 4294901760, %v50_v9  ;;  %v145_v14 = vsub.f32 %v29_v1, %v57_v5  ;;  %42 = vperm.xlu0 %1885, %v34_v12  }
   0x7   :  { %14 = vsyncpa [#allocation4], 0  ;;  %v1779_v15 = vpack.c.bf16 %v60_v8, %v57_v5  ;;  %v152_v17 = vsub.f32 %v54_v4, %v60_v8  ;;  %v33_v20 = vld [vmem:[%s2022_s2] sm:$0xff]  ;;  %vm574_vm2 = vcmask 97280   ;;  %v563_v43 = vld [vmem:[%s2024_s4 + $0x8] sm:$0x1] }
   0x8   :  { %v124_v16 = vsub.f32 %v47_v7, %v123_v10  ;;  %v134_v18 = vsub.f32 %v50_v9, %v133_v13  ;;  %v146_v19 = vand.u32 4294901760, %v145_v14  ;;  %v560_v36 = vld [vmem:[%s2023_s3] sm:$0xff]  ;;  %571 = vperm.xlu1 %1886, %v563_v43   ;;  %v561_v45 = vld [vmem:[%s2023_s3 + $0x8] sm:$0x1]  ;;  %vm581_vm3 = vcmask 1043456  }
   0x9   :  { %1792 = vmatprep.subr.bf16.mxu0 %v1779_v15  ;;  %1780 = vmatprep.subr.bf16.mxu1 %v1779_v15  ;;  %v153_v22 = vand.u32 4294901760, %v152_v17  ;;  %v1090_v32 = vld [vmem:[#allocation2] sm:$0x1]  ;;  %v1787_v35 = vpack.c.bf16 %v152_v17, %v145_v14  ;;  %v576_v37 = vsel %vm574_vm2, %v560_v36, 0  ;;  %v579_v46 = vsel %vm574_vm2, %v561_v45, 0 }
   0xa   :  { %v125_v21 = vand.u32 4294901760, %v124_v16  ;;  %1794 = vmatpush3.bf16.msra.mxu0 %v1779_v15  ;;  %1782 = vmatpush3.bf16.msra.mxu1 %v1779_v15  ;;  %v135_v23 = vand.u32 4294901760, %v134_v18  ;;  %v147_v24 = vsub.f32 %v145_v14, %v146_v19  ;;  %v1984_v38 = vand.u32 4294901760, %v576_v37  ;;  %v562_v44 = vld [vmem:[%s2024_s4] sm:$0xff] }
   0xb   :  { %v1795_v26 = vpack.c.bf16 %v153_v22, %v146_v19  ;;  %v154_v27 = vsub.f32 %v152_v17, %v153_v22  ;;  %37 = vperm.xlu0 %1885, %v33_v20   ;;  %v662_v48 = vand.u32 4294901760, %v579_v46  ;;  %vm1917_vm4 = vmmov 0   ;;  %v1089_v17 = vld [vmem:[%s2025_s5] sm:$0x1]  ;;  %s1919_s5 = smov [#allocation3]  }
   0xc   :  { %1678 = vmatprep.mubr.f32.mxu0 %v125_v21  ;;  %v126_v25 = vsub.f32 %v124_v16, %v125_v21  ;;  %v136_v28 = vsub.f32 %v134_v18, %v135_v23  ;;  %v148_v29 = vand.u32 4294901760, %v147_v24  ;;  %v653_v39 = vsub.f32 %v576_v37, %v1984_v38  ;;  %566 = vperm.xlu1 %1886, %v562_v44   ;;  %s1579_s19 = sshll.u32 %s1919_s5, 4  ;;  %s1580_s19 = int_to_ptr.vmem [resolvable:$true] %s1579_s19 }
   0xd   :  { %1679 = vmatmul.mubr.f32.vlgmr.msra.gmra.mrb[0].mxu0 %v135_v23  ;;  %1796 = vmatprep.subr.bf16.mxu0 %v1795_v26  ;;  %v155_v31 = vand.u32 4294901760, %v154_v27  ;;  %v663_v52 = vsub.f32 %v579_v46, %v662_v48  ;;  %vm1100_vm5 = vcmask 72704   ;;  %vm1104_vm6 = vcmask 1040384   ;;  %s1891_s20 = scalar_lea.vmem %s1580_s19, 16  ;;  %s1895_s21 = scalar_lea.vmem %s1580_s19, 32 }
   0xe   :  { %v127_v30 = vand.u32 4294901760, %v126_v25  ;;  %v137_v33 = vand.u32 4294901760, %v136_v28  ;;  %1798 = vmatpush3.bf16.msra.mxu0 %v1795_v26  ;;  %1685 = vmatprep.mubr.f32.mxu0 %v123_v10  ;;  %v654_v40 = vand.u32 4294901760, %v653_v39  ;;  %p1892_p0 = scmp.ne.s32.totalorder %s1580_s19, %s1891_s20  ;;  %p1896_p1 = scmp.lt.s32.totalorder %s1580_s19, %s1580_s19 }
   0xf   :  { %v1783_v34 = vpack.c.bf16 %v155_v31, %v148_v29  ;;  %1800 = vmatprep.subr.bf16.mxu0 %v1779_v15  ;;  %1093 = vperm.xlu0 %1885, %v1090_v32   ;;  %v664_v59 = vand.u32 4294901760, %v663_v52  ;;  %p1897_p2 = scmp.lt.s32.totalorder %s1895_s21, %s1891_s20 }
  0x10   :  { %1657 = vmatprep.mubr.f32.mxu1 %v127_v30  ;;  %v655_v41 = vsub.f32 %v653_v39, %v654_v40 }
  0x11   :  { %1658 = vmatmul.mubr.f32.vlgmr.msra.gmra.mrb[0].mxu1 %v137_v33  ;;  %1784 = vmatprep.subr.bf16.mxu1 %v1783_v34  ;;  %v665_v1 = vsub.f32 %v663_v52, %v664_v59  ;;  %p1898_p3 = por %p1897_p2, %p1896_p1 }
  0x12   :  { %1664 = vmatprep.mubr.f32.mxu1 %v123_v10  ;;  %1786 = vmatpush3.bf16.msra.mxu1 %v1783_v34  ;;  %v656_v42 = vand.u32 4294901760, %v655_v41 }
  0x13   :  { %1788 = vmatprep.subr.bf16.mxu1 %v1787_v35  ;;  %v666_v5 = vand.u32 4294901760, %v665_v1  ;;  %p1899_p4 = pnand %p1898_p3, %p1892_p0 }
  0x15   :  { %1686 = vmatmul.mubr.f32.vlgmr.msra.gmra.mrb[0].mxu0 %v133_v13 }
  0x16   :  { %1802 = vmatpush3.bf16.msra.mxu0 %v1779_v15  ;;  %1692 = vmatprep.mubr.f32.mxu0 %v123_v10  ;;  %v1916_v15 = vmov 0.0|0.0  }
  0x17   :  { %1827 = vmatprep.subr.bf16.mxu0 %v1916_v15 }
  0x19   :  { %1665 = vmatmul.mubr.f32.vlgmr.msra.gmra.mrb[0].mxu1 %v133_v13 }
  0x1a   :  { %1790 = vmatpush3.bf16.msra.mxu1 %v1787_v35  ;;  %1671 = vmatprep.mubr.f32.mxu1 %v124_v16  ;;  %v1918_v16 = vmov 0.0  }
  0x1d   :  { %1693 = vmatmul.mubr.f32.vlgmr.msra.gmra.mrb[0].mxu0 %v133_v13 }
  0x1e   :  { %1741 = vmatprep.mubr.msk.f32.mxu0 %vm1917_vm4, %v1918_v16 }
  0x21   :  { %1672 = vmatmul.mubr.f32.vlgmr.msra.gmra.mrb[0].mxu1 %v134_v18  ;;  %v1102_v18 = vsel %vm1100_vm5, %v1089_v17, 0 }
  0x22   :  { %1699 = vmatprep.mubr.f32.mxu1 %v656_v42  ;;  %v1175_v19 = vand.u32 4294901760, %v1102_v18 }
  0x24   :  { %v1176_v21 = vsub.f32 %v1102_v18, %v1175_v19 }
  0x26   :  { %v1177_v26 = vand.u32 4294901760, %v1176_v21 }
  0x28   :  { %v1178_v31 = vsub.f32 %v1176_v21, %v1177_v26 }
  0x2a   :  { %v1179_v37 = vand.u32 4294901760, %v1178_v31 }
  0x85   :  { %v43_v47 = vpop.permute.xlu0 %42 }
  0x87   :  { %v572_v20 = vpop.permute.xlu1 %571 }
  0x8a   :  { %v38_v53 = vpop.permute.xlu0 %37 }
  0x8b   :  { %v567_v23 = vpop.permute.xlu1 %566 }
  0xf0   :  { %v1694_v49 = vpop.f32.mrb[0].mxu0 }
  0xf1   :  { %v548_v50 = vpop.f32.mrb[1].mxu0 }
  0xf4   :  { %v1673_v51 = vpop.f32.mrb[0].mxu1 }
  0xf5   :  { %v1845_v54 = vadd.f32 %v1673_v51, %v43_v47  ;;  %v302_v55 = vpop.f32.mrb[1].mxu1  ;;  %v1096_v47 = vlaneseq }
  0xf6   :  { %v1847_v56 = vadd.f32 %v302_v55, %v38_v53 }
  0xf7   :  { %v1846_v57 = vadd.f32 %v1845_v54, %v1694_v49 }
  0xf8   :  { %v1848_v58 = vadd.f32 %v1847_v56, %v548_v50  ;;  %v1094_v50 = vpop.permute.xlu0 %1093 }
  0xf9   :  { %v559_v60 = vmax.f32 %v1846_v57, 0.0 }
  0xfa   :  { %v558_v61 = vmax.f32 %v1848_v58, 0.0 }
  0xfb   :  { %v583_v62 = vsel %vm581_vm3, %v559_v60, 0 }
  0xfc   :  { %v589_v63 = vand.u32 4294901760, %v583_v62  ;;  %v586_v0 = vand.u32 4294901760, %v558_v61 }
  0xfe   :  { %v681_v2 = vsub.f32 %v583_v62, %v589_v63  ;;  %v1803_v3 = vpack.c.bf16 %v589_v63, %v586_v0  ;;  %v674_v4 = vsub.f32 %v558_v61, %v586_v0 }
 0x100   :  { %1804 = vmatprep.subr.bf16.mxu1 %v1803_v3  ;;  %v675_v6 = vand.u32 4294901760, %v674_v4  ;;  %v682_v7 = vand.u32 4294901760, %v681_v2  ;;  %v1811_v8 = vpack.c.bf16 %v681_v2, %v674_v4 }
 0x101   :  { %1806 = vmatpush3.bf16.msra.mxu1 %v1803_v3 }
 0x102   :  { %v676_v9 = vsub.f32 %v674_v4, %v675_v6  ;;  %v683_v10 = vsub.f32 %v681_v2, %v682_v7  ;;  %v1819_v11 = vpack.c.bf16 %v682_v7, %v675_v6 }
 0x104   :  { %1700 = vmatmul.mubr.f32.vlgmr.msra.gmra.mrb[2].mxu1 %v666_v5  ;;  %v677_v12 = vand.u32 4294901760, %v676_v9  ;;  %v684_v13 = vand.u32 4294901760, %v683_v10 }
 0x105   :  { %1706 = vmatprep.mubr.f32.mxu1 %v1984_v38 }
 0x106   :  { %v1807_v14 = vpack.c.bf16 %v684_v13, %v677_v12 }
 0x108   :  { %1808 = vmatprep.subr.bf16.mxu1 %v1807_v14 }
 0x109   :  { %1810 = vmatpush3.bf16.msra.mxu1 %v1807_v14 }
 0x10a   :  { %1812 = vmatprep.subr.bf16.mxu1 %v1811_v8 }
 0x10c   :  { %1707 = vmatmul.mubr.f32.vlgmr.msra.gmra.mrb[2].mxu1 %v662_v48 }
 0x10d   :  { %1814 = vmatpush3.bf16.msra.mxu1 %v1811_v8  ;;  %1713 = vmatprep.mubr.f32.mxu1 %v653_v39 }
 0x10e   :  { %1816 = vmatprep.subr.bf16.mxu1 %v1803_v3 }
 0x114   :  { %1714 = vmatmul.mubr.f32.vlgmr.msra.gmra.mrb[2].mxu1 %v663_v52 }
 0x115   :  { %1818 = vmatpush3.bf16.msra.mxu1 %v1803_v3  ;;  %1720 = vmatprep.mubr.f32.mxu1 %v654_v40 }
 0x116   :  { %1820 = vmatprep.subr.bf16.mxu1 %v1819_v11 }
 0x11c   :  { %1721 = vmatmul.mubr.f32.vlgmr.msra.gmra.mrb[2].mxu1 %v664_v59 }
 0x11d   :  { %1822 = vmatpush3.bf16.msra.mxu1 %v1819_v11  ;;  %1727 = vmatprep.mubr.f32.mxu1 %v1984_v38 }
 0x11e   :  { %1824 = vmatprep.subr.bf16.mxu1 %v1803_v3 }
 0x124   :  { %1728 = vmatmul.mubr.f32.vlgmr.msra.gmra.mrb[2].mxu1 %v662_v48 }
 0x125   :  { %1826 = vmatpush3.bf16.msra.mxu1 %v1803_v3  ;;  %1734 = vmatprep.mubr.f32.mxu1 %v1984_v38 }
 0x12c   :  { %1735 = vmatmul.mubr.f32.vlgmr.msra.gmra.mrb[2].mxu1 %v662_v48  ;;  %v1097_v48 = vshrl.u32 %v1096_v47, 7 }
 0x12e   :  { %v1098_v49 = vsub.s32 0, %v1097_v48 }
 0x130   :  { %v1099_v51 = vrot.slane %v1094_v50, %v1098_v49 }
 0x1ff   :  { %v1736_v22 = vpop.f32.mrb[2].mxu1 }
 0x200   :  { %v1849_v24 = vadd.f32 %v1736_v22, %v572_v20  ;;  %v1077_v25 = vpop.f32.mrb[3].mxu1 }
 0x201   :  { %v1850_v27 = vadd.f32 %v1077_v25, %v567_v23 }
 0x202   :  { %v1088_v28 = vmax.f32 %v1849_v24, 0.0 }
 0x203   :  { %v1087_v29 = vmax.f32 %v1850_v27, 0.0 }
 0x204   :  { %v1106_v30 = vsel %vm1104_vm6, %v1088_v28, 0 }
 0x205   :  { %v1112_v32 = vand.u32 4294901760, %v1106_v30  ;;  %v1109_v33 = vand.u32 4294901760, %v1087_v29 }
 0x207   :  { %v1194_v34 = vsub.f32 %v1106_v30, %v1112_v32  ;;  %v1828_v35 = vpack.c.bf16 %v1112_v32, %v1109_v33  ;;  %v1187_v36 = vsub.f32 %v1087_v29, %v1109_v33 }
 0x209   :  { %v1195_v38 = vand.u32 4294901760, %v1194_v34  ;;  %v1188_v39 = vand.u32 4294901760, %v1187_v36  ;;  %1829 = vmatpush3.bf16.msra.mxu0 %v1828_v35  ;;  %v1834_v40 = vpack.c.bf16 %v1194_v34, %v1187_v36 }
 0x20a   :  { %1830 = vmatprep.subr.bf16.mxu0 %v1916_v15 }
 0x20b   :  { %v1196_v41 = vsub.f32 %v1194_v34, %v1195_v38  ;;  %v1189_v42 = vsub.f32 %v1187_v36, %v1188_v39  ;;  %v1840_v43 = vpack.c.bf16 %v1195_v38, %v1188_v39 }
 0x20c   :  { %1742 = vmatmul.mubr.f32.vlgmr.msra.gmra.mrb[2].mxu0 %v1179_v37 }
 0x20d   :  { %v1197_v44 = vand.u32 4294901760, %v1196_v41  ;;  %v1190_v45 = vand.u32 4294901760, %v1189_v42  ;;  %1748 = vmatprep.mubr.msk.f32.mxu0 %vm1917_vm4, %v1918_v16 }
 0x20f   :  { %v1831_v46 = vpack.c.bf16 %v1197_v44, %v1190_v45 }
 0x211   :  { %1832 = vmatpush3.bf16.msra.mxu0 %v1831_v46 }
 0x212   :  { %1833 = vmatprep.subr.bf16.mxu0 %v1916_v15 }
 0x214   :  { %1749 = vmatmul.mubr.f32.vlgmr.msra.gmra.mrb[2].mxu0 %v1175_v19 }
 0x215   :  { %1835 = vmatpush3.bf16.msra.mxu0 %v1834_v40  ;;  %1755 = vmatprep.mubr.msk.f32.mxu0 %vm1917_vm4, %v1918_v16 }
 0x216   :  { %1836 = vmatprep.subr.bf16.mxu0 %v1916_v15 }
 0x21c   :  { %1756 = vmatmul.mubr.f32.vlgmr.msra.gmra.mrb[2].mxu0 %v1176_v21 }
 0x21d   :  { %1838 = vmatpush3.bf16.msra.mxu0 %v1828_v35  ;;  %1762 = vmatprep.mubr.msk.f32.mxu0 %vm1917_vm4, %v1918_v16 }
 0x21e   :  { %1839 = vmatprep.subr.bf16.mxu0 %v1916_v15 }
 0x224   :  { %1763 = vmatmul.mubr.f32.vlgmr.msra.gmra.mrb[2].mxu0 %v1177_v26 }
 0x225   :  { %1841 = vmatpush3.bf16.msra.mxu0 %v1840_v43  ;;  %1769 = vmatprep.mubr.msk.f32.mxu0 %vm1917_vm4, %v1918_v16 }
 0x226   :  { %1842 = vmatprep.subr.bf16.mxu0 %v1916_v15 }
 0x22c   :  { %1770 = vmatmul.mubr.f32.vlgmr.msra.gmra.mrb[2].mxu0 %v1175_v19 }
 0x22d   :  { %1844 = vmatpush3.bf16.msra.mxu0 %v1828_v35  ;;  %1776 = vmatprep.mubr.msk.f32.mxu0 %vm1917_vm4, %v1918_v16 }
 0x234   :  { %1777 = vmatmul.mubr.f32.vlgmr.msra.gmra.mrb[2].mxu0 %v1175_v19 }
 0x307   :  { %v1563_v52 = vpop.f32.mrb[2].mxu0 }
 0x308   :  { %v1851_v53 = vadd.f32 %v1563_v52, %v1099_v51  ;;  %v1778_v54 = vpop.f32.mrb[3].mxu0 }
 0x30a   :  { %v1567_v55 = vsub.f32 0.0, %v1851_v53 }
 0x30c   :  { %v1568_v56 = vmul.f32 1.442695, %v1567_v55 }
 0x30e   :  { %1887 = vpow2.f32 %v1568_v56 }
 0x318   :  { %v1888_v57 = vpop.eup %1887 }
 0x319   :  { %v1570_v58 = vadd.f32 1.0, %v1888_v57 }
 0x31b   :  { %1889 = vrcp.f32 %v1570_v58 }
 0x325   :  { %v1890_v59 = vpop.eup %1889 }
 0x326   :  { %1572 = vst [vmem:[#allocation3] sm:$0x1] %v1890_v59 }
 0x327   :  { %1902 = shalt.err (!%p1899_p4)
}
 0x328   :  { %s1903_s24 = scalar_lea.hbm %s2027_s7, 16 }
 0x329   :  { %p1904_p5 = scmp.ne.s32.totalorder %s2027_s7, %s1903_s24  ;;  %p1907_p6 = scmp.lt.u32.totalorder %s1903_s24, %s2027_s7 }
 0x32b   :  { %p1909_p7 = pnand %p1907_p6, %p1904_p5 }
 0x32d   :  { %1912 = shalt.err (!%p1909_p7)
}
 0x32e   :  { %1582 = dma.vmem_to_hbm [thread:$0]  %s1580_s19, 16, %s2027_s7, [#allocation4]  }
 0x32f   :  { %1913 = dma.done.wait [#allocation4], 16  }
 0x330   :  { %1914 = vsyncadd [#allocation4], 4294967280 }
 0x331   :  { %1586 = vsyncpa [#allocation4], 1 }

</bundles_post_ra>
